<compile_context>
chip_gen: v7x
topology: tpu7x:2x2x1
jax: 0.10.0
libtpu: 0.0.40
codegen_flags: <defaults>
</compile_context>

<pallas_src>
import jax
import jax.numpy as jnp
from jax.experimental import pallas as pl
from jax.experimental.pallas import tpu as pltpu


def critic_kernel(s_ref, a_ref, w1s_ref, w1a_ref, b1_ref, w2_ref, b2_ref,
                  wq_ref, bq_ref, q_ref):
    mxu = w1s_ref.dtype                       # MXU input dtype (f32 or bf16)
    s = s_ref[...].astype(mxu)
    a = a_ref[...].astype(mxu)

    # fc1: fused concat -> split matmul, f32 accumulation on the MXU.
    h1 = (jnp.dot(s, w1s_ref[...], preferred_element_type=jnp.float32)
          + jnp.dot(a, w1a_ref[...], preferred_element_type=jnp.float32)
          + b1_ref[...])
    h1 = jnp.maximum(h1, 0.0)                 # ReLU in f32 (v5e VPU has no bf16)

    # fc2
    h2 = jnp.dot(h1.astype(mxu), w2_ref[...],
                 preferred_element_type=jnp.float32) + b2_ref[...]
    h2 = jnp.maximum(h2, 0.0)

    # q head (out_features = 1): broadcast-multiply + lane reduce on VPU/XLU.
    q = jnp.sum(h2 * wq_ref[...].astype(jnp.float32), axis=-1, keepdims=True)
    q = q + bq_ref[0, 0]                      # scalar bias from SMEM
    q_ref[...] = q.astype(q_ref.dtype)


def _pick_batch_tile(batch, cap=256):
    """Largest batch tile <= cap that evenly divides batch (multiple of 8 when
    tiling); falls back to the whole batch as a single block."""
    if batch <= cap:
        return batch
    for bm in range(cap, 7, -8):
        if batch % bm == 0:
            return bm
    return batch


def critic_forward(state, action, params, *, mxu_dtype=jnp.float32):
    """state: [B, input_dims], action: [B, n_actions] -> q: [B, 1] (float32)."""
    w1s, w1a, b1, w2, b2, wq, bq = params
    B, d_s = state.shape
    d_a = action.shape[1]
    fc1 = w1s.shape[1]
    fc2 = w2.shape[1]

    # Weights in the MXU input dtype (bf16 halves weight DMA bytes and doubles
    # MXU rate on v6e/v7x); biases stay f32 for the post-MXU elementwise math.
    cast = lambda w: w.astype(mxu_dtype)
    w1s, w1a, w2, wq = cast(w1s), cast(w1a), cast(w2), cast(wq)
    b1 = b1.astype(jnp.float32)
    b2 = b2.astype(jnp.float32)
    bq = bq.astype(jnp.float32).reshape(1, 1)

    bm = _pick_batch_tile(B)
    grid = (B // bm,)

    # Weights/biases: full-extent blocks with a constant index_map -> fetched
    # once, resident in VMEM across all batch tiles.
    full = lambda arr: pl.BlockSpec(arr.shape, lambda i: (0,) * arr.ndim)

    # Advisory cost so XLA overlaps neighbors with this (tiny) custom call.
    flops = 2 * B * (d_s * fc1 + d_a * fc1 + fc1 * fc2 + fc2)
    bytes_accessed = sum(int(x.size * x.dtype.itemsize)
                         for x in (state, action, w1s, w1a, b1, w2, b2, wq, bq))
    bytes_accessed += B * 4  # output

    # VMEM budget: resident weights + double-buffered activation/output tiles,
    # capped well below v7x's 64 MiB physical VMEM.
    wbytes = sum(int(x.size * x.dtype.itemsize)
                 for x in (w1s, w1a, b1, w2, b2, wq))
    act_bytes = bm * (d_s + d_a + fc1 + fc2 + 1) * 4
    vmem_limit = int(min(48 << 20, max(4 << 20, 2 * (wbytes + 4 * act_bytes))))

    return pl.pallas_call(
        critic_kernel,
        out_shape=jax.ShapeDtypeStruct((B, 1), jnp.float32),
        grid=grid,
        in_specs=[
            pl.BlockSpec((bm, d_s), lambda i: (i, 0)),          # state tile
            pl.BlockSpec((bm, d_a), lambda i: (i, 0)),          # action tile
            full(w1s), full(w1a), full(b1), full(w2), full(b2), full(wq),
            pl.BlockSpec(memory_space=pltpu.MemorySpace.SMEM),  # bq scalar
        ],
        # TODO(synk): (B, 1) output keeps the module interface but is a 1-lane
        # store; fuse q into a wider downstream consumer if it ever matters.
        out_specs=pl.BlockSpec((bm, 1), lambda i: (i, 0)),
        compiler_params=pltpu.CompilerParams(
            dimension_semantics=("parallel",),   # shard batch tiles over TCs (v7x)
            vmem_limit_bytes=vmem_limit),
        cost_estimate=pl.CostEstimate(
            flops=flops, transcendentals=0, bytes_accessed=bytes_accessed),
    )(state, action, w1s, w1a, b1, w2, b2, wq, bq)


def init_params(key, input_dims, n_actions, fc1_dims, fc2_dims):
    """torch.nn.Linear-style U(-1/sqrt(fan_in), 1/sqrt(fan_in)) init.
    Weights stored transposed (in, out); W1 pre-split into state/action rows;
    q-head weight stored as a (1, fc2) row for the in-kernel VPU reduction."""
    d_in = input_dims + n_actions
    k1, k2, k3 = jax.random.split(key, 3)

    def linear(k, fan_in, fan_out):
        kw, kb = jax.random.split(k)
        bound = float(fan_in) ** -0.5
        w = jax.random.uniform(kw, (fan_in, fan_out), jnp.float32, -bound, bound)
        b = jax.random.uniform(kb, (1, fan_out), jnp.float32, -bound, bound)
        return w, b

    w1, b1 = linear(k1, d_in, fc1_dims)
    w2, b2 = linear(k2, fc1_dims, fc2_dims)
    wq, bq = linear(k3, fc2_dims, 1)
    w1_s, w1_a = w1[:input_dims], w1[input_dims:]
    return (w1_s, w1_a, b1, w2, b2, wq.reshape(1, fc2_dims), bq.reshape(1, 1))


def critic_reference(state, action, params, *, mxu_dtype=jnp.float32):
    """Pure-JAX reference mimicking the kernel's cast pattern."""
    w1s, w1a, b1, w2, b2, wq, bq = params
    c = lambda x: x.astype(mxu_dtype)
    f32 = jnp.float32
    h1 = jnp.maximum(
        jnp.dot(c(state), c(w1s), preferred_element_type=f32)
        + jnp.dot(c(action), c(w1a), preferred_element_type=f32) + b1, 0.0)
    h2 = jnp.maximum(
        jnp.dot(c(h1), c(w2), preferred_element_type=f32) + b2, 0.0)
    return jnp.sum(h2 * c(wq).astype(f32), axis=-1, keepdims=True) + bq.reshape(1, 1)


if __name__ == "__main__":
    # Small shapes consistent with the module: state dim 16, 4 actions,
    # hidden 32, batch 8.  (For real SAC training run B >= 256 so the parallel
    # batch grid and bf16 MXU path actually pay off.)
    B, INPUT_DIMS, N_ACTIONS, FC1, FC2 = 8, 16, 4, 32, 32

    key = jax.random.PRNGKey(0)
    kp, ks, ka = jax.random.split(key, 3)
    params = init_params(kp, INPUT_DIMS, N_ACTIONS, FC1, FC2)
    state = jax.random.normal(ks, (B, INPUT_DIMS), jnp.float32)
    action = jax.random.normal(ka, (B, N_ACTIONS), jnp.float32)

    # f32 MXU path: matches the PyTorch module's numerics.
    q = jax.block_until_ready(critic_forward(state, action, params))
    q_ref = critic_reference(state, action, params)
    assert q.shape == (B, 1)
    assert jnp.allclose(q, q_ref, atol=1e-4, rtol=1e-4), (q, q_ref)

    # bf16 MXU fast path (v6e/v7x): compared against a reference using the
    # same bf16-input / f32-accumulate casts.
    q_bf = jax.block_until_ready(
        critic_forward(state, action, params, mxu_dtype=jnp.bfloat16))
    q_bf_ref = critic_reference(state, action, params, mxu_dtype=jnp.bfloat16)
    assert jnp.allclose(q_bf, q_bf_ref, atol=5e-3, rtol=5e-3), (q_bf, q_bf_ref)

    print("KERNEL_OK")
</pallas_src>

<mosaic_0001>
module attributes {stable_mosaic.version = 11 : i64} {
  func.func @critic_kernel(%arg0: i32, %arg1: memref<8x16xf32, #tpu.memory_space<vmem>>, %arg2: memref<8x4xf32, #tpu.memory_space<vmem>>, %arg3: memref<16x32xf32, #tpu.memory_space<vmem>>, %arg4: memref<4x32xf32, #tpu.memory_space<vmem>>, %arg5: memref<1x32xf32, #tpu.memory_space<vmem>>, %arg6: memref<32x32xf32, #tpu.memory_space<vmem>>, %arg7: memref<1x32xf32, #tpu.memory_space<vmem>>, %arg8: memref<1x32xf32, #tpu.memory_space<vmem>>, %arg9: memref<1x1xf32, #tpu.memory_space<smem>>, %arg10: memref<8x1xf32, #tpu.memory_space<vmem>>) attributes {dimension_semantics = [#tpu.dimension_semantics<parallel>], iteration_bounds = array<i64: 1>, scalar_prefetch = 0 : i64, scratch_operands = 0 : i64, tpu.core_type = #tpu.core_type<tc>, window_params = [{transform_indices = @transform_0, window_bounds = array<i64: 8, 16>}, {transform_indices = @transform_1, window_bounds = array<i64: 8, 4>}, {pipeline_mode = #tpu.pipeline_mode<synchronous>, transform_indices = @transform_2, window_bounds = array<i64: 16, 32>}, {pipeline_mode = #tpu.pipeline_mode<synchronous>, transform_indices = @transform_3, window_bounds = array<i64: 4, 32>}, {pipeline_mode = #tpu.pipeline_mode<synchronous>, transform_indices = @transform_4, window_bounds = array<i64: 1, 32>}, {pipeline_mode = #tpu.pipeline_mode<synchronous>, transform_indices = @transform_5, window_bounds = array<i64: 32, 32>}, {pipeline_mode = #tpu.pipeline_mode<synchronous>, transform_indices = @transform_6, window_bounds = array<i64: 1, 32>}, {pipeline_mode = #tpu.pipeline_mode<synchronous>, transform_indices = @transform_7, window_bounds = array<i64: 1, 32>}, {transform_indices = @transform_8, window_bounds = array<i64: 1, 1>}, {transform_indices = @transform_9, window_bounds = array<i64: 8, 1>}]} {
    %c0 = arith.constant 0 : index
    %c0_0 = arith.constant 0 : index
    %0 = vector.load %arg1[%c0, %c0_0] : memref<8x16xf32, #tpu.memory_space<vmem>>, vector<8x16xf32>
    %c0_1 = arith.constant 0 : index
    %c0_2 = arith.constant 0 : index
    %1 = vector.load %arg2[%c0_1, %c0_2] : memref<8x4xf32, #tpu.memory_space<vmem>>, vector<8x4xf32>
    %c0_3 = arith.constant 0 : index
    %c0_4 = arith.constant 0 : index
    %2 = vector.load %arg3[%c0_3, %c0_4] : memref<16x32xf32, #tpu.memory_space<vmem>>, vector<16x32xf32>
    %cst = arith.constant dense<0.000000e+00> : vector<8x32xf32>
    %3 = tpu.matmul %0, %2, %cst {dimension_numbers = #tpu.dot_dimension_numbers<[1], [0], [0], [1], [0, 0, 1, 1], [], []>} : vector<8x16xf32>, vector<16x32xf32>, vector<8x32xf32> -> vector<8x32xf32>
    %c0_5 = arith.constant 0 : index
    %c0_6 = arith.constant 0 : index
    %4 = vector.load %arg4[%c0_5, %c0_6] : memref<4x32xf32, #tpu.memory_space<vmem>>, vector<4x32xf32>
    %cst_7 = arith.constant dense<0.000000e+00> : vector<8x32xf32>
    %5 = tpu.matmul %1, %4, %cst_7 {dimension_numbers = #tpu.dot_dimension_numbers<[1], [0], [0], [1], [0, 0, 1, 1], [], []>} : vector<8x4xf32>, vector<4x32xf32>, vector<8x32xf32> -> vector<8x32xf32>
    %6 = arith.addf %3, %5 : vector<8x32xf32>
    %c0_8 = arith.constant 0 : index
    %c0_9 = arith.constant 0 : index
    %7 = vector.load %arg5[%c0_8, %c0_9] : memref<1x32xf32, #tpu.memory_space<vmem>>, vector<1x32xf32>
    %8 = vector.broadcast %7 : vector<1x32xf32> to vector<8x32xf32>
    %9 = arith.addf %6, %8 : vector<8x32xf32>
    %cst_10 = arith.constant 0.000000e+00 : f32
    %10 = vector.broadcast %cst_10 : f32 to vector<8x32xf32>
    %11 = arith.maximumf %9, %10 : vector<8x32xf32>
    %c0_11 = arith.constant 0 : index
    %c0_12 = arith.constant 0 : index
    %12 = vector.load %arg6[%c0_11, %c0_12] : memref<32x32xf32, #tpu.memory_space<vmem>>, vector<32x32xf32>
    %cst_13 = arith.constant dense<0.000000e+00> : vector<8x32xf32>
    %13 = tpu.matmul %11, %12, %cst_13 {dimension_numbers = #tpu.dot_dimension_numbers<[1], [0], [0], [1], [0, 0, 1, 1], [], []>} : vector<8x32xf32>, vector<32x32xf32>, vector<8x32xf32> -> vector<8x32xf32>
    %c0_14 = arith.constant 0 : index
    %c0_15 = arith.constant 0 : index
    %14 = vector.load %arg7[%c0_14, %c0_15] : memref<1x32xf32, #tpu.memory_space<vmem>>, vector<1x32xf32>
    %15 = vector.broadcast %14 : vector<1x32xf32> to vector<8x32xf32>
    %16 = arith.addf %13, %15 : vector<8x32xf32>
    %cst_16 = arith.constant 0.000000e+00 : f32
    %17 = vector.broadcast %cst_16 : f32 to vector<8x32xf32>
    %18 = arith.maximumf %16, %17 : vector<8x32xf32>
    %c0_17 = arith.constant 0 : index
    %c0_18 = arith.constant 0 : index
    %19 = vector.load %arg8[%c0_17, %c0_18] : memref<1x32xf32, #tpu.memory_space<vmem>>, vector<1x32xf32>
    %20 = vector.broadcast %19 : vector<1x32xf32> to vector<8x32xf32>
    %21 = arith.mulf %18, %20 : vector<8x32xf32>
    %cst_19 = arith.constant dense<0.000000e+00> : vector<8xf32>
    %22 = vector.multi_reduction <add>, %21, %cst_19 [1] : vector<8x32xf32> to vector<8xf32>
    %23 = vector.shape_cast %22 : vector<8xf32> to vector<8x1xf32>
    %c0_20 = arith.constant 0 : index
    %c0_21 = arith.constant 0 : index
    %24 = memref.load %arg9[%c0_20, %c0_21] : memref<1x1xf32, #tpu.memory_space<smem>>
    %25 = vector.broadcast %24 : f32 to vector<8x1xf32>
    %26 = arith.addf %23, %25 : vector<8x1xf32>
    %c0_22 = arith.constant 0 : index
    %c0_23 = arith.constant 0 : index
    %27 = vector.load %arg10[%c0_22, %c0_23] : memref<8x1xf32, #tpu.memory_space<vmem>>, vector<8x1xf32>
    tpu.vector_store %arg10[%c0_22, %c0_23], %26 {strides = array<i32>} : memref<8x1xf32, #tpu.memory_space<vmem>>, vector<8x1xf32>,
    return
  }
  func.func @transform_0(%arg0: i32) -> (i32, i32) {
    %c0_i32 = arith.constant 0 : i32
    %c0_i32_0 = arith.constant 0 : i32
    return %arg0, %c0_i32 : i32, i32
  }
  func.func @transform_1(%arg0: i32) -> (i32, i32) {
    %c0_i32 = arith.constant 0 : i32
    %c0_i32_0 = arith.constant 0 : i32
    return %arg0, %c0_i32 : i32, i32
  }
  func.func @transform_2(%arg0: i32) -> (i32, i32) {
    %c0_i32 = arith.constant 0 : i32
    %c0_i32_0 = arith.constant 0 : i32
    %c0_i32_1 = arith.constant 0 : i32
    return %c0_i32, %c0_i32_0 : i32, i32
  }
  func.func @transform_3(%arg0: i32) -> (i32, i32) {
    %c0_i32 = arith.constant 0 : i32
    %c0_i32_0 = arith.constant 0 : i32
    %c0_i32_1 = arith.constant 0 : i32
    return %c0_i32, %c0_i32_0 : i32, i32
  }
  func.func @transform_4(%arg0: i32) -> (i32, i32) {
    %c0_i32 = arith.constant 0 : i32
    %c0_i32_0 = arith.constant 0 : i32
    %c0_i32_1 = arith.constant 0 : i32
    return %c0_i32, %c0_i32_0 : i32, i32
  }
  func.func @transform_5(%arg0: i32) -> (i32, i32) {
    %c0_i32 = arith.constant 0 : i32
    %c0_i32_0 = arith.constant 0 : i32
    %c0_i32_1 = arith.constant 0 : i32
    return %c0_i32, %c0_i32_0 : i32, i32
  }
  func.func @transform_6(%arg0: i32) -> (i32, i32) {
    %c0_i32 = arith.constant 0 : i32
    %c0_i32_0 = arith.constant 0 : i32
    %c0_i32_1 = arith.constant 0 : i32
    return %c0_i32, %c0_i32_0 : i32, i32
  }
  func.func @transform_7(%arg0: i32) -> (i32, i32) {
    %c0_i32 = arith.constant 0 : i32
    %c0_i32_0 = arith.constant 0 : i32
    %c0_i32_1 = arith.constant 0 : i32
    return %c0_i32, %c0_i32_0 : i32, i32
  }
  func.func @transform_8(%arg0: i32) -> (i32, i32) {
    %c0_i32 = arith.constant 0 : i32
    %c0_i32_0 = arith.constant 0 : i32
    %c0_i32_1 = arith.constant 0 : i32
    return %c0_i32, %c0_i32_0 : i32, i32
  }
  func.func @transform_9(%arg0: i32) -> (i32, i32) {
    %c0_i32 = arith.constant 0 : i32
    %c0_i32_0 = arith.constant 0 : i32
    return %arg0, %c0_i32 : i32, i32
  }
}

</mosaic_0001>

<bundles_post_ra>
// kernel: tpu_custom_call.1
= control target key start
LH: loop header
LB: loop body
LE: loop exit
PB: predicated region body
PF: predicated region fallthrough
CT: control target
= control target key end

     0   :  { %15 = vsyncpa [#allocation4], 0  ;;  %s595_s0 = inlined_call_operand.hbm [shape: f32[8,16], index: 0, kind: input, shape index: {}]   ;;  %s596_s1 = inlined_call_operand.vmem [shape: f32[8,4], index: 1, kind: input, shape index: {}]   ;;  %s597_s2 = inlined_call_operand.hbm [shape: f32[16,32], index: 2, kind: input, shape index: {}]   ;;  %s598_s3 = inlined_call_operand.hbm [shape: f32[4,32], index: 3, kind: input, shape index: {}]   ;;  %s599_s4 = inlined_call_operand.vmem [shape: f32[1,32], index: 4, kind: input, shape index: {}]   ;;  %s600_s5 = inlined_call_operand.vmem [shape: f32[32,32], index: 5, kind: input, shape index: {}]   ;;  %s601_s6 = inlined_call_operand.vmem [shape: f32[1,32], index: 6, kind: input, shape index: {}]   ;;  %s602_s7 = inlined_call_operand.vmem [shape: f32[1,32], index: 7, kind: input, shape index: {}]   ;;  %s603_s8 = inlined_call_operand.<no memory space> [shape: f32[1,1], index: 8, kind: input, shape index: {}]   ;;  %s604_s9 = inlined_call_operand.vmem [shape: f32[8,1], index: 9, kind: output, shape index: {}]  }
   0x1   :  { %16 = vsyncpa [#allocation6], 0  ;;  %s471_s30 = smov [#allocation5]   ;;  %s401_s13 = scalar_lea.hbm %s597_s2, 256 }
   0x2   :  { %s34_s10 = sshll.u32 %s471_s30, 4  ;;  %p402_p0 = scmp.ne.s32.totalorder %s597_s2, %s401_s13  ;;  %s35_s10 = int_to_ptr.vmem [resolvable:$true] %s34_s10 }
   0x3   :  { %p405_p1 = scmp.lt.u32.totalorder %s401_s13, %s597_s2 }
   0x5   :  { %p407_p2 = pnand %p405_p1, %p402_p0 }
   0x7   :  { %410 = shalt.err (!%p407_p2)
}
   0x8   :  { %s411_s18 = scalar_lea.vmem %s35_s10, 256  ;;  %p416_p4 = scmp.lt.s32.totalorder %s35_s10, %s35_s10 }
   0x9   :  { %p412_p3 = scmp.ne.s32.totalorder %s35_s10, %s411_s18  ;;  %p417_p5 = scmp.lt.s32.totalorder %s411_s18, %s411_s18 }
   0xb   :  { %p418_p6 = por %p417_p5, %p416_p4 }
   0xd   :  { %p419_p7 = pnand %p418_p6, %p412_p3 }
   0xf   :  { %422 = shalt.err (!%p419_p7)
}
  0x10   :  { %s472_s19 = smov 128   ;;  %s473_s20 = smov 8  }
  0x11   :  { %40 = dma.hbm_to_vmem [thread:$0]  %s597_s2, 256, %s35_s10, [#allocation6], %s472_s19, %s472_s19, %s473_s20  }
  0x12   :  { %s474_s23 = smov [#allocation3]   ;;  %s475_s25 = smov [#allocation7]  }
  0x13   :  { %s23_s24 = sshll.u32 %s474_s23, 4  ;;  %s47_s26 = sshll.u32 %s475_s25, 4  ;;  %s24_s24 = int_to_ptr.vmem [resolvable:$true] %s23_s24  ;;  %s48_s26 = int_to_ptr.vmem [resolvable:$true] %s47_s26 }
  0x14   :  { %s423_s29 = scalar_lea.hbm %s595_s0, 128 }
  0x15   :  { %p424_p8 = scmp.ne.s32.totalorder %s595_s0, %s423_s29  ;;  %p427_p9 = scmp.lt.u32.totalorder %s423_s29, %s595_s0 }
  0x17   :  { %p429_p10 = pnand %p427_p9, %p424_p8 }
  0x19   :  { %432 = shalt.err (!%p429_p10)
}
  0x1a   :  { %s433_s2 = scalar_lea.vmem %s24_s24, 128  ;;  %p438_p12 = scmp.lt.s32.totalorder %s24_s24, %s24_s24 }
  0x1b   :  { %p434_p11 = scmp.ne.s32.totalorder %s24_s24, %s433_s2  ;;  %p439_p13 = scmp.lt.s32.totalorder %s433_s2, %s433_s2 }
  0x1d   :  { %p440_p0 = por %p439_p13, %p438_p12 }
  0x1f   :  { %p441_p1 = pnand %p440_p0, %p434_p11 }
  0x21   :  { %444 = shalt.err (!%p441_p1)
}
  0x22   :  { %26 = dma.hbm_to_vmem [thread:$0]  %s595_s0, 128, %s24_s24, [#allocation4]  }
  0x23   :  { %s445_s17 = scalar_lea.hbm %s598_s3, 64 }
  0x24   :  { %p446_p2 = scmp.ne.s32.totalorder %s598_s3, %s445_s17  ;;  %p449_p3 = scmp.lt.u32.totalorder %s445_s17, %s598_s3 }
  0x26   :  { %p451_p4 = pnand %p449_p3, %p446_p2 }
  0x28   :  { %454 = shalt.err (!%p451_p4)
}
  0x29   :  { %s455_s22 = scalar_lea.vmem %s48_s26, 64  ;;  %p460_p6 = scmp.lt.s32.totalorder %s48_s26, %s48_s26 }
  0x2a   :  { %p456_p5 = scmp.ne.s32.totalorder %s48_s26, %s455_s22  ;;  %p461_p7 = scmp.lt.s32.totalorder %s455_s22, %s455_s22 }
  0x2c   :  { %p462_p8 = por %p461_p7, %p460_p6 }
  0x2e   :  { %p463_p9 = pnand %p462_p8, %p456_p5 }
  0x30   :  { %466 = shalt.err (!%p463_p9)
}
  0x31   :  { %50 = dma.hbm_to_vmem [thread:$0]  %s598_s3, 64, %s48_s26, [#allocation6]  }
  0x32   :  { %467 = dma.done.wait [#allocation4], 128  }
  0x33   :  { %468 = vsyncadd [#allocation4], 4294967168 }
  0x34   :  { %469 = dma.done.wait [#allocation6], 320  }
  0x35   :  { %470 = vsyncadd [#allocation6], 4294966976  ;;  %v476_v0 = vmov 0.0   ;;  %vm477_vm0 = vmmov 0   ;;  %v478_v1 = vmov 0.0|0.0   ;;  %vm79_vm1 = vcmask 1043456  }
  0x36   :  { %361 = vmatprep.subr.mxu1 %v476_v0  ;;  %363 = vmatprep.mubr.msk.f32.mxu1 %vm477_vm0, %v476_v0  ;;  %vm75_vm2 = vcmask 31744   ;;  %v74_v2 = vld [vmem:[#allocation7] sm:$0xf]  ;;  %v71_v3 = vld [vmem:[%s596_s1] sm:$0xff]  ;;  %v72_v4 = vld [vmem:[#allocation5] sm:$0xff]  ;;  %vm153_vm3 = vcmask 130048   ;;  %v334_v30 = vstv %s603_s8 }
  0x37   :  { %387 = vmatprep.subr.bf16.mxu0 %v478_v1  ;;  %381 = vmatprep.mubr.msk.f32.mxu0 %vm477_vm0, %v476_v0  ;;  %v73_v5 = vld [vmem:[#allocation5 + $0x8] sm:$0xff]  ;;  %v70_v7 = vld [vmem:[#allocation3] sm:$0xff]  ;;  %v237_v9 = vld [vmem:[%s600_s5 + $0x8] sm:$0xff]  ;;  %vm247_vm4 = vcmask 261120   ;;  %vm336_vm5 = vcmask 7168  }
  0x38   :  { %362 = vmatpush3.msk.msra.mxu1 %vm79_vm1, %v74_v2  ;;  %v385_v6 = vpack.c.bf16 %v73_v5, %v72_v4  ;;  %v236_v8 = vld [vmem:[%s600_s5] sm:$0xff]  ;;  %v238_v11 = vld [vmem:[%s600_s5 + $0x10] sm:$0xff]  ;;  %v239_v12 = vld [vmem:[%s600_s5 + $0x18] sm:$0xff] }
  0x39   :  { %364 = vmatmul.mubr.msk.f32.vlgmr.msra.gmra.mrb[0].mxu1 %vm75_vm2, %v71_v3  ;;  %384 = vmatprep.subr.bf16.mxu1 %v478_v1  ;;  %v388_v10 = vpack.c.bf16 %v237_v9, %v236_v8  ;;  %v391_v13 = vpack.c.bf16 %v239_v12, %v238_v11  ;;  %v347_v17 = vld [vmem:[%s599_s4] ss:$0 sm:$0xff] }
  0x3a   :  { %370 = vmatprep.mubr.msk.f32.mxu1 %vm477_vm0, %v476_v0  ;;  %386 = vmatpush3.bf16.msra.mxu1 %v385_v6  ;;  %v348_v22 = vld [vmem:[%s601_s6] ss:$0 sm:$0xff] }
  0x3b   :  { %389 = vmatpush3.bf16.msra.mxu0 %v388_v10  ;;  %v350_v26 = vld [vmem:[%s602_s7] ss:$0 sm:$0xff] }
  0x3c   :  { %390 = vmatprep.subr.bf16.mxu0 %v478_v1 }
  0x3d   :  { %371 = vmatmul.mubr.msk.f32.vlgmr.msra.gmra.mrb[2].mxu1 %vm153_vm3, %v70_v7 }
  0x3f   :  { %392 = vmatpush3.bf16.msra.mxu0 %v391_v13 }
 0x10c   :  { %v149_v14 = vpop.f32.mrb[0].mxu1 }
 0x10d   :  { %v365_v15 = vpop.f32.mrb[1].mxu1 }
 0x110   :  { %v223_v16 = vpop.f32.mrb[2].mxu1 }
 0x111   :  { %v224_v18 = vadd.f32 %v223_v16, %v149_v14  ;;  %v372_v19 = vpop.f32.mrb[3].mxu1 }
 0x113   :  { %v234_v20 = vadd.f32 %v347_v17, %v224_v18 }
 0x115   :  { %v235_v21 = vmax.f32 %v234_v20, 0.0 }
 0x117   :  { %382 = vmatmul.mubr.msk.f32.vlgmr.msra.gmra.mrb[0].mxu0 %vm247_vm4, %v235_v21 }
 0x1ea   :  { %v317_v23 = vpop.f32.mrb[0].mxu0 }
 0x1eb   :  { %v318_v24 = vadd.f32 %v348_v22, %v317_v23  ;;  %v383_v25 = vpop.f32.mrb[1].mxu0 }
 0x1ed   :  { %v321_v27 = vmax.f32 %v318_v24, 0.0 }
 0x1ef   :  { %v329_v28 = vmul.f32 %v350_v26, %v321_v27 }
 0x1f1   :  { %v330_v29 = vsel %vm247_vm4, %v329_v28, 0.0 }
 0x1f2   :  { %331 = vadd.xlane.f32.xlu0 %v330_v29 }
 0x27f   :  { %v332_v31 = vpop.xlane.xlu0 %331 }
 0x280   :  { %v335_v32 = vadd.f32 %v334_v30, %v332_v31 }
 0x282   :  { %337 = vst.msk [vmem:[%s604_s9] sm:$0xff] %vm336_vm5, %v335_v32 }
 0x283   :  { %342 = vsyncpa [#allocation4], 1 }
 0x284   :  { %343 = vsyncpa [#allocation6], 1 }

</bundles_post_ra>
